<compile_context>
chip_gen: v7x
topology: tpu7x:2x2x1
jax: 0.10.0
libtpu: 0.0.40
codegen_flags: <defaults>
</compile_context>

<pallas_src>
import jax
import jax.numpy as jnp
from jax.experimental import pallas as pl
from jax.experimental.pallas import tpu as pltpu


def _round_up(x, m):
    return (x + m - 1) // m * m


def _actor_kernel(x_ref, w1_ref, b1_ref, w2_ref, b2_ref,
                  w3_ref, b3_ref, w4_ref, b4_ref, o_ref):
    """Fused fc1->relu->fc2->relu->fc3->relu->fc4->softmax(dim=1) on one batch tile."""
    # bf16 operands feed the MXU; accumulation + epilogue stay f32.
    h = jnp.dot(x_ref[...].astype(jnp.bfloat16), w1_ref[...],
                preferred_element_type=jnp.float32)
    h = jnp.maximum(h + b1_ref[...], 0.0)

    h = jnp.dot(h.astype(jnp.bfloat16), w2_ref[...],
                preferred_element_type=jnp.float32)
    h = jnp.maximum(h + b2_ref[...], 0.0)

    h = jnp.dot(h.astype(jnp.bfloat16), w3_ref[...],
                preferred_element_type=jnp.float32)
    h = jnp.maximum(h + b3_ref[...], 0.0)

    logits = jnp.dot(h.astype(jnp.bfloat16), w4_ref[...],
                     preferred_element_type=jnp.float32) + b4_ref[...]

    # Numerically-stable softmax over the natural-width action axis.
    # Exact divide (approx reciprocal broke the row-sum-to-1 invariant).
    m = jnp.max(logits, axis=1, keepdims=True)
    e = jnp.exp(logits - m)
    denom = jnp.sum(e, axis=1, keepdims=True)
    o_ref[...] = (e / denom).astype(o_ref.dtype)


def _choose_tile_b(batch, requested):
    """Batch tile: multiple of 8, <= requested, and small enough that the
    grid has >= 4 steps when the batch permits (2 per TC on v7x)."""
    requested = max(8, _round_up(requested, 8))
    tile = min(requested, _round_up(batch, 8))
    cap = max(8, _round_up(pl.cdiv(batch, 4), 8))
    return max(8, min(tile, cap))


def actor_forward(x, params, *, tile_b=1024, constant_fold_single_action=True):
    """x: [B, hidden_rnn] (f32 or bf16).  params: (in,out) weights, (1,out) biases."""
    B, hidden_rnn = x.shape
    w4 = params["w4"]
    nb_actions = w4.shape[1]

    # Production config of the module (nb_actions hard-coded to 1): softmax
    # over a size-1 axis is identically 1.0 regardless of x, so the whole
    # MLP is dead compute.  Skip the kernel and all HBM traffic.
    if nb_actions == 1 and constant_fold_single_action:
        return jnp.ones((B, 1), jnp.float32)

    w1, b1 = params["w1"], params["b1"]
    w2, b2 = params["w2"], params["b2"]
    w3, b3 = params["w3"], params["b3"]
    b4 = params["b4"]

    # bf16 weights feed the MXU; biases stay f32 for the f32 epilogue.
    # (Weights are a few KiB total and resident in VMEM across the grid.)
    w1b = w1.astype(jnp.bfloat16)
    w2b = w2.astype(jnp.bfloat16)
    w3b = w3.astype(jnp.bfloat16)
    w4b = w4.astype(jnp.bfloat16)
    b1f = b1.astype(jnp.float32)
    b2f = b2.astype(jnp.float32)
    b3f = b3.astype(jnp.float32)
    b4f = b4.astype(jnp.float32)

    tb = _choose_tile_b(B, tile_b)
    grid = (pl.cdiv(B, tb),)          # ragged last tile handled by Pallas masking

    batch_map = lambda i: (i, 0)      # x / out tiles march along the batch
    resident = lambda i: (0, 0)       # weights & biases stay put in VMEM

    h1, h2, h3 = w1.shape[1], w2.shape[1], w3.shape[1]
    flops = 2 * B * (hidden_rnn * h1 + h1 * h2 + h2 * h3 + h3 * nb_actions)
    bytes_accessed = (x.size * x.dtype.itemsize
                      + (w1b.size + w2b.size + w3b.size + w4b.size) * 2
                      + (b1f.size + b2f.size + b3f.size + b4f.size) * 4
                      + B * nb_actions * 4)
    cost = pl.CostEstimate(flops=flops,
                           transcendentals=B * nb_actions,
                           bytes_accessed=bytes_accessed)

    return pl.pallas_call(
        _actor_kernel,
        out_shape=jax.ShapeDtypeStruct((B, nb_actions), jnp.float32),
        grid=grid,
        in_specs=[
            pl.BlockSpec((tb, hidden_rnn), batch_map),
            pl.BlockSpec(w1b.shape, resident), pl.BlockSpec(b1f.shape, resident),
            pl.BlockSpec(w2b.shape, resident), pl.BlockSpec(b2f.shape, resident),
            pl.BlockSpec(w3b.shape, resident), pl.BlockSpec(b3f.shape, resident),
            pl.BlockSpec(w4b.shape, resident), pl.BlockSpec(b4f.shape, resident),
        ],
        out_specs=pl.BlockSpec((tb, nb_actions), batch_map),
        compiler_params=pltpu.CompilerParams(
            dimension_semantics=("parallel",)),   # v7x megacore batch split
        cost_estimate=cost,
    )(x, w1b, b1f, w2b, b2f, w3b, b3f, w4b, b4f)


def init_actor_params(key, hidden_rnn, hidden_fc1, hidden_fc2, hidden_fc3,
                      init_w=3e-3, nb_actions=1):
    """Deterministic re-creation of Actor.init_weights semantics.

    PyTorch weight shape is (out, in); fanin_init uses fanin = size[0] = out.
    Weights are stored pre-transposed as (in, out) for the kernel.
    Biases keep nn.Linear's default uniform(+-1/sqrt(in_features)) init.
    """
    keys = jax.random.split(key, 8)

    def fanin_weight(k, in_f, out_f):
        v = 1.0 / jnp.sqrt(jnp.float32(out_f))  # fanin = size[0] = out_features
        w = jax.random.uniform(k, (out_f, in_f), jnp.float32, -v, v)
        return w.T  # (in, out)

    def default_bias(k, in_f, out_f):
        v = 1.0 / jnp.sqrt(jnp.float32(in_f))
        return jax.random.uniform(k, (1, out_f), jnp.float32, -v, v)

    w4 = jax.random.uniform(keys[6], (nb_actions, hidden_fc3), jnp.float32,
                            -init_w, init_w).T

    return {
        "w1": fanin_weight(keys[0], hidden_rnn, hidden_fc1),
        "b1": default_bias(keys[1], hidden_rnn, hidden_fc1),
        "w2": fanin_weight(keys[2], hidden_fc1, hidden_fc2),
        "b2": default_bias(keys[3], hidden_fc1, hidden_fc2),
        "w3": fanin_weight(keys[4], hidden_fc2, hidden_fc3),
        "b3": default_bias(keys[5], hidden_fc2, hidden_fc3),
        "w4": w4,
        "b4": default_bias(keys[7], hidden_fc3, nb_actions),
    }


def _ref_forward(x, p):
    # Pure-JAX reference emulating the kernel's bf16-in / f32-accum matmuls.
    def mm(a, w):
        return jnp.dot(a.astype(jnp.bfloat16), w.astype(jnp.bfloat16),
                       preferred_element_type=jnp.float32)
    h = jnp.maximum(mm(x, p["w1"]) + p["b1"], 0.0)
    h = jnp.maximum(mm(h, p["w2"]) + p["b2"], 0.0)
    h = jnp.maximum(mm(h, p["w3"]) + p["b3"], 0.0)
    logits = mm(h, p["w4"]) + p["b4"]
    return jax.nn.softmax(logits, axis=1)


if __name__ == "__main__":
    key = jax.random.PRNGKey(0)
    k_param, k_x, k_param2, k_x2, k_x3 = jax.random.split(key, 5)

    hidden_rnn, hidden_fc1, hidden_fc2, hidden_fc3 = 32, 64, 64, 32

    # --- Test 1: the actual module config (nb_actions = 1, hard-coded). ---
    # Softmax over a size-1 axis is 1.0 for every input, so the forward is
    # constant-folded (no kernel launch, no HBM traffic).
    params1 = init_actor_params(k_param, hidden_rnn, hidden_fc1,
                                hidden_fc2, hidden_fc3, init_w=3e-3,
                                nb_actions=1)
    x1 = jax.random.normal(k_x, (8, hidden_rnn), jnp.float32)
    out1 = actor_forward(x1, params1)
    jax.block_until_ready(out1)
    assert out1.shape == (8, 1)
    assert jnp.allclose(out1, _ref_forward(x1, params1), atol=1e-6), \
        "mismatch vs reference (nb_actions=1, folded)"

    # --- Test 2: run the fused kernel (nb_actions = 4, even batch tiling). ---
    params4 = init_actor_params(k_param2, hidden_rnn, hidden_fc1,
                                hidden_fc2, hidden_fc3, init_w=3e-3,
                                nb_actions=4)
    x2 = jax.random.normal(k_x2, (16, hidden_rnn), jnp.float32)
    out2 = actor_forward(x2, params4)
    jax.block_until_ready(out2)
    exp2 = _ref_forward(x2, params4)
    assert out2.shape == (16, 4)
    assert jnp.allclose(out2, exp2, atol=2e-2), "mismatch vs reference (nb_actions=4)"
    assert jnp.allclose(jnp.sum(out2, axis=1), 1.0, atol=1e-3), \
        "softmax rows must sum to 1"

    # --- Test 3: ragged batch (B=20 -> grid=3, last tile masked, no jnp.pad). ---
    x3 = jax.random.normal(k_x3, (20, hidden_rnn), jnp.float32)
    out3 = actor_forward(x3, params4)
    jax.block_until_ready(out3)
    exp3 = _ref_forward(x3, params4)
    assert out3.shape == (20, 4)
    assert jnp.allclose(out3, exp3, atol=2e-2), "mismatch vs reference (ragged batch)"
    assert jnp.allclose(jnp.sum(out3, axis=1), 1.0, atol=1e-3), \
        "softmax rows must sum to 1 (ragged batch)"

    # --- Test 4: kernel path also correct for nb_actions = 1 (fold disabled). ---
    out4 = actor_forward(x1, params1, constant_fold_single_action=False)
    jax.block_until_ready(out4)
    assert out4.shape == (8, 1)
    assert jnp.allclose(out4, 1.0, atol=1e-6), \
        "kernel path must also produce 1.0 for nb_actions=1"

    print("KERNEL_OK")
</pallas_src>

<mosaic_0001>
module attributes {stable_mosaic.version = 11 : i64} {
  func.func @_actor_kernel(%arg0: i32, %arg1: memref<8x32xf32, #tpu.memory_space<vmem>>, %arg2: memref<32x64xbf16, #tpu.memory_space<vmem>>, %arg3: memref<1x64xf32, #tpu.memory_space<vmem>>, %arg4: memref<64x64xbf16, #tpu.memory_space<vmem>>, %arg5: memref<1x64xf32, #tpu.memory_space<vmem>>, %arg6: memref<64x32xbf16, #tpu.memory_space<vmem>>, %arg7: memref<1x32xf32, #tpu.memory_space<vmem>>, %arg8: memref<32x4xbf16, #tpu.memory_space<vmem>>, %arg9: memref<1x4xf32, #tpu.memory_space<vmem>>, %arg10: memref<8x4xf32, #tpu.memory_space<vmem>>) attributes {dimension_semantics = [#tpu.dimension_semantics<parallel>], iteration_bounds = array<i64: 2>, scalar_prefetch = 0 : i64, scratch_operands = 0 : i64, tpu.core_type = #tpu.core_type<tc>, window_params = [{transform_indices = @transform_0, window_bounds = array<i64: 8, 32>}, {pipeline_mode = #tpu.pipeline_mode<synchronous>, transform_indices = @transform_1, window_bounds = array<i64: 32, 64>}, {pipeline_mode = #tpu.pipeline_mode<synchronous>, transform_indices = @transform_2, window_bounds = array<i64: 1, 64>}, {pipeline_mode = #tpu.pipeline_mode<synchronous>, transform_indices = @transform_3, window_bounds = array<i64: 64, 64>}, {pipeline_mode = #tpu.pipeline_mode<synchronous>, transform_indices = @transform_4, window_bounds = array<i64: 1, 64>}, {pipeline_mode = #tpu.pipeline_mode<synchronous>, transform_indices = @transform_5, window_bounds = array<i64: 64, 32>}, {pipeline_mode = #tpu.pipeline_mode<synchronous>, transform_indices = @transform_6, window_bounds = array<i64: 1, 32>}, {pipeline_mode = #tpu.pipeline_mode<synchronous>, transform_indices = @transform_7, window_bounds = array<i64: 32, 4>}, {pipeline_mode = #tpu.pipeline_mode<synchronous>, transform_indices = @transform_8, window_bounds = array<i64: 1, 4>}, {transform_indices = @transform_9, window_bounds = array<i64: 8, 4>}]} {
    %c0 = arith.constant 0 : index
    %c0_0 = arith.constant 0 : index
    %0 = vector.load %arg1[%c0, %c0_0] : memref<8x32xf32, #tpu.memory_space<vmem>>, vector<8x32xf32>
    %1 = arith.truncf %0 : vector<8x32xf32> to vector<8x32xbf16>
    %c0_1 = arith.constant 0 : index
    %c0_2 = arith.constant 0 : index
    %2 = vector.load %arg2[%c0_1, %c0_2] : memref<32x64xbf16, #tpu.memory_space<vmem>>, vector<32x64xbf16>
    %cst = arith.constant dense<0.000000e+00> : vector<8x64xf32>
    %3 = tpu.matmul %1, %2, %cst {dimension_numbers = #tpu.dot_dimension_numbers<[1], [0], [0], [1], [0, 0, 1, 1], [], []>} : vector<8x32xbf16>, vector<32x64xbf16>, vector<8x64xf32> -> vector<8x64xf32>
    %c0_3 = arith.constant 0 : index
    %c0_4 = arith.constant 0 : index
    %4 = vector.load %arg3[%c0_3, %c0_4] : memref<1x64xf32, #tpu.memory_space<vmem>>, vector<1x64xf32>
    %5 = vector.broadcast %4 : vector<1x64xf32> to vector<8x64xf32>
    %6 = arith.addf %3, %5 : vector<8x64xf32>
    %cst_5 = arith.constant 0.000000e+00 : f32
    %7 = vector.broadcast %cst_5 : f32 to vector<8x64xf32>
    %8 = arith.maximumf %6, %7 : vector<8x64xf32>
    %9 = arith.truncf %8 : vector<8x64xf32> to vector<8x64xbf16>
    %c0_6 = arith.constant 0 : index
    %c0_7 = arith.constant 0 : index
    %10 = vector.load %arg4[%c0_6, %c0_7] : memref<64x64xbf16, #tpu.memory_space<vmem>>, vector<64x64xbf16>
    %cst_8 = arith.constant dense<0.000000e+00> : vector<8x64xf32>
    %11 = tpu.matmul %9, %10, %cst_8 {dimension_numbers = #tpu.dot_dimension_numbers<[1], [0], [0], [1], [0, 0, 1, 1], [], []>} : vector<8x64xbf16>, vector<64x64xbf16>, vector<8x64xf32> -> vector<8x64xf32>
    %c0_9 = arith.constant 0 : index
    %c0_10 = arith.constant 0 : index
    %12 = vector.load %arg5[%c0_9, %c0_10] : memref<1x64xf32, #tpu.memory_space<vmem>>, vector<1x64xf32>
    %13 = vector.broadcast %12 : vector<1x64xf32> to vector<8x64xf32>
    %14 = arith.addf %11, %13 : vector<8x64xf32>
    %cst_11 = arith.constant 0.000000e+00 : f32
    %15 = vector.broadcast %cst_11 : f32 to vector<8x64xf32>
    %16 = arith.maximumf %14, %15 : vector<8x64xf32>
    %17 = arith.truncf %16 : vector<8x64xf32> to vector<8x64xbf16>
    %c0_12 = arith.constant 0 : index
    %c0_13 = arith.constant 0 : index
    %18 = vector.load %arg6[%c0_12, %c0_13] : memref<64x32xbf16, #tpu.memory_space<vmem>>, vector<64x32xbf16>
    %cst_14 = arith.constant dense<0.000000e+00> : vector<8x32xf32>
    %19 = tpu.matmul %17, %18, %cst_14 {dimension_numbers = #tpu.dot_dimension_numbers<[1], [0], [0], [1], [0, 0, 1, 1], [], []>} : vector<8x64xbf16>, vector<64x32xbf16>, vector<8x32xf32> -> vector<8x32xf32>
    %c0_15 = arith.constant 0 : index
    %c0_16 = arith.constant 0 : index
    %20 = vector.load %arg7[%c0_15, %c0_16] : memref<1x32xf32, #tpu.memory_space<vmem>>, vector<1x32xf32>
    %21 = vector.broadcast %20 : vector<1x32xf32> to vector<8x32xf32>
    %22 = arith.addf %19, %21 : vector<8x32xf32>
    %cst_17 = arith.constant 0.000000e+00 : f32
    %23 = vector.broadcast %cst_17 : f32 to vector<8x32xf32>
    %24 = arith.maximumf %22, %23 : vector<8x32xf32>
    %25 = arith.truncf %24 : vector<8x32xf32> to vector<8x32xbf16>
    %c0_18 = arith.constant 0 : index
    %c0_19 = arith.constant 0 : index
    %26 = vector.load %arg8[%c0_18, %c0_19] : memref<32x4xbf16, #tpu.memory_space<vmem>>, vector<32x4xbf16>
    %cst_20 = arith.constant dense<0.000000e+00> : vector<8x4xf32>
    %27 = tpu.matmul %25, %26, %cst_20 {dimension_numbers = #tpu.dot_dimension_numbers<[1], [0], [0], [1], [0, 0, 1, 1], [], []>} : vector<8x32xbf16>, vector<32x4xbf16>, vector<8x4xf32> -> vector<8x4xf32>
    %c0_21 = arith.constant 0 : index
    %c0_22 = arith.constant 0 : index
    %28 = vector.load %arg9[%c0_21, %c0_22] : memref<1x4xf32, #tpu.memory_space<vmem>>, vector<1x4xf32>
    %29 = vector.broadcast %28 : vector<1x4xf32> to vector<8x4xf32>
    %30 = arith.addf %27, %29 : vector<8x4xf32>
    %cst_23 = arith.constant dense<0xFF800000> : vector<8xf32>
    %31 = vector.multi_reduction <maximumf>, %30, %cst_23 [1] : vector<8x4xf32> to vector<8xf32>
    %32 = vector.shape_cast %31 : vector<8xf32> to vector<8x1xf32>
    %33 = vector.broadcast %32 : vector<8x1xf32> to vector<8x4xf32>
    %34 = arith.subf %30, %33 : vector<8x4xf32>
    %35 = math.exp %34 : vector<8x4xf32>
    %cst_24 = arith.constant dense<0.000000e+00> : vector<8xf32>
    %36 = vector.multi_reduction <add>, %35, %cst_24 [1] : vector<8x4xf32> to vector<8xf32>
    %37 = vector.shape_cast %36 : vector<8xf32> to vector<8x1xf32>
    %38 = vector.broadcast %37 : vector<8x1xf32> to vector<8x4xf32>
    %39 = arith.divf %35, %38 : vector<8x4xf32>
    %c0_25 = arith.constant 0 : index
    %c0_26 = arith.constant 0 : index
    %40 = vector.load %arg10[%c0_25, %c0_26] : memref<8x4xf32, #tpu.memory_space<vmem>>, vector<8x4xf32>
    tpu.vector_store %arg10[%c0_25, %c0_26], %39 {strides = array<i32>} : memref<8x4xf32, #tpu.memory_space<vmem>>, vector<8x4xf32>,
    return
  }
  func.func @transform_0(%arg0: i32) -> (i32, i32) {
    %c0_i32 = arith.constant 0 : i32
    %c0_i32_0 = arith.constant 0 : i32
    return %arg0, %c0_i32 : i32, i32
  }
  func.func @transform_1(%arg0: i32) -> (i32, i32) {
    %c0_i32 = arith.constant 0 : i32
    %c0_i32_0 = arith.constant 0 : i32
    %c0_i32_1 = arith.constant 0 : i32
    return %c0_i32, %c0_i32_0 : i32, i32
  }
  func.func @transform_2(%arg0: i32) -> (i32, i32) {
    %c0_i32 = arith.constant 0 : i32
    %c0_i32_0 = arith.constant 0 : i32
    %c0_i32_1 = arith.constant 0 : i32
    return %c0_i32, %c0_i32_0 : i32, i32
  }
  func.func @transform_3(%arg0: i32) -> (i32, i32) {
    %c0_i32 = arith.constant 0 : i32
    %c0_i32_0 = arith.constant 0 : i32
    %c0_i32_1 = arith.constant 0 : i32
    return %c0_i32, %c0_i32_0 : i32, i32
  }
  func.func @transform_4(%arg0: i32) -> (i32, i32) {
    %c0_i32 = arith.constant 0 : i32
    %c0_i32_0 = arith.constant 0 : i32
    %c0_i32_1 = arith.constant 0 : i32
    return %c0_i32, %c0_i32_0 : i32, i32
  }
  func.func @transform_5(%arg0: i32) -> (i32, i32) {
    %c0_i32 = arith.constant 0 : i32
    %c0_i32_0 = arith.constant 0 : i32
    %c0_i32_1 = arith.constant 0 : i32
    return %c0_i32, %c0_i32_0 : i32, i32
  }
  func.func @transform_6(%arg0: i32) -> (i32, i32) {
    %c0_i32 = arith.constant 0 : i32
    %c0_i32_0 = arith.constant 0 : i32
    %c0_i32_1 = arith.constant 0 : i32
    return %c0_i32, %c0_i32_0 : i32, i32
  }
  func.func @transform_7(%arg0: i32) -> (i32, i32) {
    %c0_i32 = arith.constant 0 : i32
    %c0_i32_0 = arith.constant 0 : i32
    %c0_i32_1 = arith.constant 0 : i32
    return %c0_i32, %c0_i32_0 : i32, i32
  }
  func.func @transform_8(%arg0: i32) -> (i32, i32) {
    %c0_i32 = arith.constant 0 : i32
    %c0_i32_0 = arith.constant 0 : i32
    %c0_i32_1 = arith.constant 0 : i32
    return %c0_i32, %c0_i32_0 : i32, i32
  }
  func.func @transform_9(%arg0: i32) -> (i32, i32) {
    %c0_i32 = arith.constant 0 : i32
    %c0_i32_0 = arith.constant 0 : i32
    return %arg0, %c0_i32 : i32, i32
  }
}

</mosaic_0001>

<bundles_post_ra>
// kernel: tpu_custom_call.1
= control target key start
LH: loop header
LB: loop body
LE: loop exit
PB: predicated region body
PF: predicated region fallthrough
CT: control target
= control target key end

     0   :  { %14 = vsyncpa [#allocation3], 0  ;;  %s943_s30 = smov 0   ;;  %s1062_s0 = inlined_call_operand.vmem [shape: f32[16,32], index: 0, kind: input, shape index: {}]   ;;  %s1063_s1 = inlined_call_operand.vmem [shape: bf16[32,64], index: 1, kind: input, shape index: {}]   ;;  %s1064_s2 = inlined_call_operand.vmem [shape: f32[1,64], index: 2, kind: input, shape index: {}]   ;;  %s1065_s3 = inlined_call_operand.vmem [shape: bf16[64,64], index: 3, kind: input, shape index: {}]   ;;  %s1066_s4 = inlined_call_operand.hbm [shape: f32[1,64], index: 4, kind: input, shape index: {}]   ;;  %s1067_s5 = inlined_call_operand.vmem [shape: bf16[64,32], index: 5, kind: input, shape index: {}]   ;;  %s1068_s6 = inlined_call_operand.vmem [shape: f32[1,32], index: 6, kind: input, shape index: {}]   ;;  %s1069_s7 = inlined_call_operand.vmem [shape: bf16[32,4], index: 7, kind: input, shape index: {}]   ;;  %s1070_s8 = inlined_call_operand.vmem [shape: f32[1,4], index: 8, kind: input, shape index: {}]   ;;  %s1071_s9 = inlined_call_operand.vmem [shape: f32[16,4], index: 9, kind: output, shape index: {}]  }
   0x1 LB: > { %s949_s10 = sadd.s32 4294967295, %s888_s30   ;;  %p728_p0 = scmp.ge.s32.totalorder %s888_s30, 1  ;;  %s888_s30 = sphi %s943_s30, %s20_s30  }
   0x2   : > { %p245_p1 = scmp.lt.s32.totalorder %s888_s30, 3  ;;  %p1072_p3 = scmp.eq.s32.totalorder %s949_s10, 0 }
   0x3   : > { %s890_s12 = smov [#allocation2]   ;;  %s850_s17 = scalar_lea.hbm %s1066_s4, 16 }
   0x4   : > { %p953_p2 = pnand %p728_p0, %p245_p1  ;;  %s267_s13 = sshll.u32 %s890_s12, 4  ;;  %s268_s13 = int_to_ptr.vmem [resolvable:$true] %s267_s13 }
   0x5   : > { %p851_p6 = scmp.ne.s32.totalorder %s1066_s4, %s850_s17  ;;  %p857_p10 = scmp.lt.u32.totalorder %s850_s17, %s1066_s4 }
   0x6   : > { %s1074_s11 = scalar_select %p953_p2, 1, 0 }
   0x7   : > { %p817_p4 = pneg %p953_p2 }
   0x9   : > { %p962_p5 = pnand %p1072_p3, %p817_p4 }
   0xb   : > { %p852_p7 = pneg %p962_p5 }
   0xd   : > { %p853_p8 = pnand %p852_p7, %p851_p6 }
   0xf   : > { %p854_p9 = pneg %p853_p8 }
  0x11   : > { %p859_p11 = pnand %p857_p10, %p854_p9 }
  0x13   : > { %862 = shalt.err (!%p859_p11)
}
  0x14   : > { %s863_s22 = scalar_lea.vmem %s268_s13, 16  ;;  %s870_s23 = scalar_lea.vmem %s268_s13, 32 }
  0x15   : > { %p864_p12 = scmp.ne.s32.totalorder %s268_s13, %s863_s22  ;;  %p871_p1 = scmp.lt.s32.totalorder %s268_s13, %s268_s13 }
  0x16   : > { %p872_p4 = scmp.lt.s32.totalorder %s870_s23, %s863_s22 }
  0x17   : > { %p866_p13 = pnand %p864_p12, %p852_p7 }
  0x18   : > { %p873_p3 = por %p872_p4, %p871_p1 }
  0x19   : > { %p867_p0 = pneg %p866_p13 }
  0x1b   : > { %p874_p2 = pnand %p873_p3, %p867_p0 }
  0x1d   : > { %877 = shalt.err (!%p874_p2)
}
  0x1e   : > { %820 = dma.hbm_to_vmem [thread:$0]  (!%p962_p5), %s1066_s4, 16, %s268_s13, [#allocation3]  }
  0x1f   : > { %p1076_p6 = scmp.ne.s32.totalorder %s1074_s11, 0 }
  0x20   : > { %p1077_p8 = scmp.eq.s32.totalorder (!%p1076_p6), %s949_s10, 0 }
  0x21   : > { %299 = sbr.rel (%p1076_p6) target bundleno = 1234 (0x4d2), region = 56 }
  0x28   : > { %883 = dma.done.wait (%p1077_p8), [#allocation3], 16   ;;  %p1078_p7 = pmov %p1077_p8 }
  0x29   : > { %p333_p9 = scmp.lt.s32.totalorder %s949_s10, 1  ;;  %v891_v0 = vmov 0.0   ;;  %vm892_vm0 = vmmov 0   ;;  %v834_v1 = vld [vmem:[%s1063_s1] sm:$0xff]   ;;  %v835_v2 = vld [vmem:[%s1063_s1 + $0x8] sm:$0xff]   ;;  %vm367_vm1 = vcmask 261120  }
  0x2a   : > { %885 = vsyncadd (%p1078_p7), [#allocation3], 4294967280  ;;  %773 = vmatprep.subr.bf16.mxu0 %v891_v0  ;;  %777 = vmatprep.mubr.msk.bf16.mxu0 %vm892_vm0, %v891_v0  ;;  %v836_v4 = vld [vmem:[%s1065_s3] sm:$0xff]   ;;  %v837_v5 = vld [vmem:[%s1065_s3 + $0x8] sm:$0xff]   ;;  %vm452_vm2 = vcmask 523264   ;;  %vm648_vm3 = vcmask 31744  }
  0x2b   : > { %s1080_s10 = smov (!%p333_p9, %s949_s10), 1  ;;  %781 = vmatprep.subr.bf16.mxu1 %v891_v0  ;;  %789 = vmatprep.mubr.msk.bf16.mxu1 %vm892_vm0, %v891_v0  ;;  %v838_v7 = vld [vmem:[%s1065_s3 + $0x10] sm:$0xff]   ;;  %v839_v8 = vld [vmem:[%s1065_s3 + $0x18] sm:$0xff]   ;;  %v840_v9 = vld [vmem:[%s1067_s5] sm:$0xff]  }
  0x2c   : > { %s733_s26 = sshll.u32 %s1080_s10, 3  ;;  %774 = vmatpush3.bf16.msra.mxu0 %v834_v1  ;;  %782 = vmatpush3.bf16.msra.mxu1 %v836_v4  ;;  %v841_v10 = vld [vmem:[%s1067_s5 + $0x8] sm:$0xff]   ;;  %v735_v11 = vld [vmem:[%s1064_s2] ss:$0 sm:$0xff]  ;;  %v842_v19 = vld [vmem:[%s1067_s5 + $0x10] sm:$0xff]  }
  0x2d   : > { %s336_s29 = scalar_lea.vmem %s1062_s0, %s733_s26  ;;  %775 = vmatprep.subr.bf16.mxu0 %v891_v0  ;;  %783 = vmatprep.subr.bf16.mxu1 %v891_v0  ;;  %v843_v20 = vld [vmem:[%s1067_s5 + $0x18] sm:$0xff]   ;;  %v844_v21 = vld [vmem:[%s1069_s7] sm:$0xff]   ;;  %v845_v30 = vld [vmem:[%s1069_s7 + $0x8] sm:$0xff]   ;;  %s340_s25 = scalar_lea.vmem %s1071_s9, %s733_s26 }
  0x2e   : > { %v342_v3 = vld [vmem:[%s336_s29] sm:$0xff] }
  0x2f   : > { %v343_v6 = vpack.c.bf16 %v342_v3, %v342_v3  ;;  %v739_v22 = vld [vmem:[#allocation2] ss:$0 sm:$0xff] }
  0x30   : > { %776 = vmatpush3.bf16.msra.mxu0 %v835_v2  ;;  %784 = vmatpush3.bf16.msra.mxu1 %v837_v5  ;;  %v745_v31 = vld [vmem:[%s1068_s6] ss:$0 sm:$0xff] }
  0x31   : > { %793 = vmatprep.subr.bf16.mxu0 %v891_v0  ;;  %785 = vmatprep.subr.bf16.mxu1 %v891_v0  ;;  %v751_v39 = vld [vmem:[%s1070_s8] ss:$0 sm:$0xff] }
  0x33   : > { %778 = vmatmul.mubr.msk.bf16.vlgmr.msra.gmra.mrb[0].mxu0 %vm367_vm1, %v343_v6 }
  0x34   : > { %801 = vmatprep.mubr.msk.bf16.mxu0 %vm892_vm0, %v891_v0  ;;  %786 = vmatpush3.bf16.msra.mxu1 %v838_v7 }
  0x35   : > { %787 = vmatprep.subr.bf16.mxu1 %v891_v0  ;;  %794 = vmatpush3.bf16.msra.mxu0 %v840_v9 }
  0x36   : > { %795 = vmatprep.subr.bf16.mxu0 %v891_v0 }
  0x38   : > { %788 = vmatpush3.bf16.msra.mxu1 %v839_v8 }
  0x39   : > { %805 = vmatprep.subr.bf16.mxu1 %v891_v0  ;;  %796 = vmatpush3.bf16.msra.mxu0 %v841_v10 }
  0x3a   : > { %797 = vmatprep.subr.bf16.mxu0 %v891_v0 }
  0x3d   : > { %798 = vmatpush3.bf16.msra.mxu0 %v842_v19 }
  0x3e   : > { %799 = vmatprep.subr.bf16.mxu0 %v891_v0 }
  0x41   : > { %800 = vmatpush3.bf16.msra.mxu0 %v843_v20 }
 0x106   : > { %v405_v12 = vpop.f32.mrb[0].mxu0 }
 0x107   : > { %v406_v13 = vadd.f32 %v735_v11, %v405_v12  ;;  %v779_v14 = vpop.f32.mrb[1].mxu0 }
 0x108   : > { %v408_v15 = vpop.f32.mrb[2].mxu0 }
 0x109   : > { %v411_v16 = vmax.f32 %v406_v13, 0.0  ;;  %v780_v17 = vpop.f32.mrb[3].mxu0 }
 0x10b   : > { %v412_v18 = vpack.c.bf16 %v411_v16, %v411_v16 }
 0x10d   : > { %790 = vmatmul.mubr.msk.bf16.vlgmr.msra.gmra.mrb[0].mxu1 %vm452_vm2, %v412_v18 }
 0x10e   : > { %809 = vmatprep.mubr.msk.bf16.mxu1 %vm892_vm0, %v891_v0  ;;  %806 = vmatpush3.bf16.msra.mxu1 %v844_v21 }
 0x10f   : > { %807 = vmatprep.subr.bf16.mxu1 %v891_v0 }
 0x112   : > { %808 = vmatpush3.bf16.msra.mxu1 %v845_v30 }
 0x1e0   : > { %v490_v23 = vpop.f32.mrb[0].mxu1 }
 0x1e1   : > { %v491_v24 = vadd.f32 %v739_v22, %v490_v23  ;;  %v791_v25 = vpop.f32.mrb[1].mxu1 }
 0x1e2   : > { %v493_v26 = vpop.f32.mrb[2].mxu1 }
 0x1e3   : > { %v496_v27 = vmax.f32 %v491_v24, 0.0  ;;  %v792_v28 = vpop.f32.mrb[3].mxu1 }
 0x1e5   : > { %v497_v29 = vpack.c.bf16 %v496_v27, %v496_v27 }
 0x1e7   : > { %802 = vmatmul.mubr.msk.bf16.vlgmr.msra.gmra.mrb[4].mxu0 %vm452_vm2, %v497_v29 }
 0x2ba   : > { %v574_v32 = vpop.f32.mrb[4].mxu0 }
 0x2bb   : > { %v575_v33 = vadd.f32 %v745_v31, %v574_v32  ;;  %v803_v34 = vpop.f32.mrb[5].mxu0 }
 0x2bc   : > { %v577_v35 = vpop.f32.mrb[6].mxu0 }
 0x2bd   : > { %v580_v36 = vmax.f32 %v575_v33, 0.0  ;;  %v804_v37 = vpop.f32.mrb[7].mxu0 }
 0x2bf   : > { %v581_v38 = vpack.c.bf16 %v580_v36, %v580_v36 }
 0x2c1   : > { %810 = vmatmul.mubr.msk.bf16.vlgmr.msra.gmra.mrb[4].mxu1 %vm367_vm1, %v581_v38 }
 0x394   : > { %v642_v40 = vpop.f32.mrb[4].mxu1 }
 0x395   : > { %v643_v41 = vadd.f32 %v751_v39, %v642_v40  ;;  %v811_v42 = vpop.f32.mrb[5].mxu1 }
 0x396   : > { %v645_v43 = vpop.f32.mrb[6].mxu1 }
 0x397   : > { %v812_v44 = vpop.f32.mrb[7].mxu1  ;;  %v649_v45 = vsel %vm648_vm3, %v643_v41, -inf }
 0x398   : > { %650 = vmax.xlane.f32.xlu0 %v649_v45 }
 0x425   : > { %v651_v46 = vpop.xlane.xlu0 %650 }
 0x426   : > { %v652_v47 = vsub.f32 %v643_v41, %v651_v46 }
 0x428   : > { %v653_v48 = vmul.f32 1.442695, %v652_v47 }
 0x42a   : > { %846 = vpow2.f32 %v653_v48 }
 0x434   : > { %v847_v49 = vpop.eup %846 }
 0x435   : > { %v655_v50 = vsel %vm648_vm3, %v847_v49, 0.0 }
 0x436   : > { %656 = vadd.xlane.f32.xlu0 %v655_v50 }
 0x4c3   : > { %v657_v51 = vpop.xlane.xlu0 %656 }
 0x4c4   : > { %848 = vrcp.f32 %v657_v51 }
 0x4ce   : > { %v849_v52 = vpop.eup %848 }
 0x4cf   : > { %v659_v53 = vmul.f32 %v849_v52, %v847_v49 }
 0x4d1   : > { %660 = vst.msk [vmem:[%s340_s25] sm:$0xff] %vm648_vm3, %v659_v53 }
 0x4d2 PF: > { %s20_s30 = sadd.s32 1, %s888_s30  }
 0x4d3   : > { %p17_p2 = scmp.ge.s32.totalorder %s20_s30, 4  }
 0x4d5   :  { %19 = sbr.rel (!%p17_p2) target bundleno = 1 (0x1), region = 91 }
 0x4dc   :  { %680 = vsyncpa [#allocation3], 1 }
 0x4dd   :  { %682 = vsyncpa [#allocation3 + $0x1], 1 }

</bundles_post_ra>
